<compile_context>
chip_gen: v6e
topology: v6e:2x2x1
jax: 0.10.0
libtpu: 0.0.40
codegen_flags: <defaults>
</compile_context>

<pallas_src>
import jax
import jax.numpy as jnp
from jax.experimental import pallas as pl
from jax.experimental.pallas import tpu as pltpu


def _cdiv(a, b):
    return -(-a // b)


def _mul_kernel(num_ref, x_ref, o_ref):
    # num_ref: (1,) scalar in SMEM (scalar-prefetch); x_ref/o_ref: VMEM tiles.
    # Cast the scalar to the tensor dtype (matches PyTorch in-dtype math).
    o_ref[...] = x_ref[...] * num_ref[0].astype(x_ref.dtype)


def mul(x, number):
    """Equivalent of Mul(number).forward(x): elementwise x * number."""
    orig_shape = x.shape

    # Match PyTorch promotion: int tensor * python float -> float tensor.
    if jnp.issubdtype(x.dtype, jnp.integer) and isinstance(number, float):
        x = x.astype(jnp.float32)

    dtype = x.dtype
    total = x.size
    if total == 0:
        return x
    itemsize = jnp.dtype(dtype).itemsize

    # Scalar travels through SMEM (32-bit container), cast in-kernel.
    scal_dtype = jnp.int32 if jnp.issubdtype(dtype, jnp.integer) else jnp.float32
    num_arr = jnp.asarray(number, dtype=scal_dtype).reshape((1,))

    # Sublane quantum: packed dtypes need more rows per vreg.
    quantum = {4: 8, 2: 16, 1: 32}.get(itemsize, 8)

    # ---- choose a lane-dense 2D layout and tiling ----
    if total % 128 == 0:
        # Lane-dense path: wide 128-multiple last dim, grid over rows.
        cols = 128
        for c in (4096, 2048, 1024, 512, 256):
            if total % c == 0 and total // c >= quantum:
                cols = c
                break
        rows = total // cols

        TARGET_BYTES = 8 << 20  # 8 MiB blocks (v7x-friendly, trivially safe on v5e/v6e)
        target_rows = max(quantum, (TARGET_BYTES // (cols * itemsize)) // quantum * quantum)
        tile_rows = rows if rows <= target_rows else target_rows
        tile_cols = cols
        num_blocks = _cdiv(rows, tile_rows)

        # Medium inputs: make sure we get ~4 blocks so both v7x TCs pipeline and
        # single-TC chips overlap prefetch/writeback (each block >= ~0.5-1 MiB).
        total_bytes = rows * cols * itemsize
        if num_blocks < 4 and total_bytes > (1 << 20) and rows >= 2 * quantum:
            desired = 4 if (rows >= 4 * quantum and total_bytes >= (2 << 20)) else 2
            tile_rows = max(quantum, ((_cdiv(rows, desired) + quantum - 1) // quantum) * quantum)
            num_blocks = _cdiv(rows, tile_rows)

        grid = (num_blocks,)
        index_map = lambda i, num: (i, 0)
    elif total % 8 == 0:
        # Fill all 8 sublanes; tile along columns with a 128-multiple width
        # (masked tail), so large awkward sizes still pipeline instead of
        # becoming one giant block.
        rows, cols = 8, total // 8
        TILE_COLS = 16384
        tile_rows = rows
        tile_cols = cols if cols <= TILE_COLS else TILE_COLS
        grid = (_cdiv(cols, tile_cols),)
        index_map = lambda j, num: (0, j)
    else:
        # Odd-sized fallback: single row, tiled along columns (masked tail).
        rows, cols = 1, total
        TILE_COLS = 32768
        tile_rows = 1
        tile_cols = cols if cols <= TILE_COLS else TILE_COLS
        grid = (_cdiv(cols, tile_cols),)
        index_map = lambda j, num: (0, j)

    x2d = x.reshape(rows, cols)

    # 1 input + 1 output, each double-buffered ~= 4 x tile_bytes; keep headroom,
    # stay below v7x's 64 MiB physical VMEM, above v5e's 16 MiB scoped default.
    tile_bytes = tile_rows * tile_cols * itemsize
    vmem_limit = int(min(max(32 << 20, 4 * tile_bytes + (4 << 20)), 56 << 20))

    out2d = pl.pallas_call(
        _mul_kernel,
        out_shape=jax.ShapeDtypeStruct((rows, cols), dtype),
        grid_spec=pltpu.PrefetchScalarGridSpec(
            num_scalar_prefetch=1,  # `number` -> SMEM once before the grid
            grid=grid,
            in_specs=[pl.BlockSpec((tile_rows, tile_cols), index_map)],
            out_specs=pl.BlockSpec((tile_rows, tile_cols), index_map),
        ),
        compiler_params=pltpu.CompilerParams(
            dimension_semantics=("parallel",),
            vmem_limit_bytes=vmem_limit,
        ),
    )(num_arr, x2d)

    return out2d.reshape(orig_shape)


class Mul:
    """Pallas equivalent of pylissom.nn.modules.lissom.Mul."""

    def __init__(self, number):
        self.number = number

    def __call__(self, x):
        return mul(x, self.number)

    def __repr__(self):
        return '*' + str(self.number)


if __name__ == "__main__":
    key = jax.random.PRNGKey(0)
    # NCHW input, small shapes: batch=2, channels=4, spatial=16x16
    x = jax.random.normal(key, (2, 4, 16, 16), dtype=jnp.float32)
    number = 2.5  # the constant passed to Mul(number)

    m = Mul(number)
    out = m(x)
    out = jax.block_until_ready(out)

    # Correctness check against the trivial reference
    ref = x * number
    assert out.shape == x.shape and out.dtype == x.dtype
    assert jnp.allclose(out, ref, atol=1e-6, rtol=1e-6)

    print("KERNEL_OK")
</pallas_src>

<mosaic_0001>
module attributes {stable_mosaic.version = 11 : i64} {
  func.func @_mul_kernel(%arg0: i32, %arg1: memref<1xf32, #tpu.memory_space<smem>>, %arg2: memref<8x256xf32, #tpu.memory_space<vmem>>, %arg3: memref<8x256xf32, #tpu.memory_space<vmem>>) attributes {dimension_semantics = [#tpu.dimension_semantics<parallel>], iteration_bounds = array<i64: 1>, scalar_prefetch = 1 : i64, scratch_operands = 0 : i64, tpu.core_type = #tpu.core_type<tc>, window_params = [{transform_indices = @transform_0, window_bounds = array<i64: 8, 256>}, {transform_indices = @transform_1, window_bounds = array<i64: 8, 256>}]} {
    %c0 = arith.constant 0 : index
    %c0_0 = arith.constant 0 : index
    %0 = vector.load %arg2[%c0, %c0_0] : memref<8x256xf32, #tpu.memory_space<vmem>>, vector<8x256xf32>
    %c0_1 = arith.constant 0 : index
    %1 = memref.load %arg1[%c0_1] : memref<1xf32, #tpu.memory_space<smem>>
    %2 = vector.broadcast %1 : f32 to vector<8x256xf32>
    %3 = arith.mulf %0, %2 : vector<8x256xf32>
    %c0_2 = arith.constant 0 : index
    %c0_3 = arith.constant 0 : index
    %4 = vector.load %arg3[%c0_2, %c0_3] : memref<8x256xf32, #tpu.memory_space<vmem>>, vector<8x256xf32>
    tpu.vector_store %arg3[%c0_2, %c0_3], %3 {strides = array<i32>} : memref<8x256xf32, #tpu.memory_space<vmem>>, vector<8x256xf32>,
    return
  }
  func.func @transform_0(%arg0: i32, %arg1: memref<1xf32, #tpu.memory_space<smem>>) -> (i32, i32) {
    %c0_i32 = arith.constant 0 : i32
    %c0_i32_0 = arith.constant 0 : i32
    return %arg0, %c0_i32 : i32, i32
  }
  func.func @transform_1(%arg0: i32, %arg1: memref<1xf32, #tpu.memory_space<smem>>) -> (i32, i32) {
    %c0_i32 = arith.constant 0 : i32
    %c0_i32_0 = arith.constant 0 : i32
    return %arg0, %c0_i32 : i32, i32
  }
}

</mosaic_0001>

<bundles_post_ra>
// kernel: tpu_custom_call.1
= control target key start
LH: loop header
LB: loop body
LE: loop exit
PB: predicated region body
PF: predicated region fallthrough
CT: control target
= control target key end

     0   :  { %8 = vsyncpa [#allocation5], 0  ;;  %s118_s0 = inlined_call_operand.<no memory space> [shape: f32[1], index: 0, kind: input, shape index: {}]   ;;  %s119_s1 = inlined_call_operand.hbm [shape: f32[8,256], index: 1, kind: input, shape index: {}]   ;;  %s120_s2 = inlined_call_operand.hbm [shape: f32[8,256], index: 2, kind: output, shape index: {}]  }
   0x1   :  { %9 = vsyncpa [#allocation6], 0  ;;  %s92_s9 = smov [#allocation4]  }
   0x2   :  { %s16_s10 = sshll.u32 %s92_s9, 4  ;;  %s17_s10 = int_to_ptr.vmem [resolvable:$true] %s16_s10 }
   0x3   :  { %s56_s11 = scalar_lea.vmem %s17_s10, 256  ;;  %p61_p1 = scmp.lt.s32.totalorder %s17_s10, %s17_s10 }
   0x4   :  { %p57_p0 = scmp.ne.s32.totalorder %s17_s10, %s56_s11  ;;  %p62_p2 = scmp.lt.s32.totalorder %s56_s11, %s56_s11 }
   0x6   :  { %p63_p3 = por %p62_p2, %p61_p1 }
   0x8   :  { %p64_p4 = pnand %p63_p3, %p57_p0 }
   0xa   :  { %67 = shalt.err (!%p64_p4)
}
   0xb   :  { %19 = dma.hbm_to_vmem [thread:$0]  %s119_s1, 256, %s17_s10, [#allocation5]  }
   0xc   :  { %88 = dma.done.wait [#allocation5], 256  }
   0xd   :  { %89 = vsyncadd [#allocation5], 4294967040  ;;  %v26_v0 = vstv %s118_s0  ;;  %s93_s16 = smov [#allocation7]   ;;  %v23_v1 = vld [vmem:[#allocation4] sm:$0xff]  ;;  %v24_v2 = vld [vmem:[#allocation4 + $0x8] sm:$0xff] }
   0xe   :  { %s37_s17 = sshll.u32 %s93_s16, 4  ;;  %v27_v3 = vmul.f32 %v26_v0, %v23_v1  ;;  %v28_v4 = vmul.f32 %v26_v0, %v24_v2  ;;  %s38_s17 = int_to_ptr.vmem [resolvable:$true] %s37_s17 }
   0xf   :  { %s68_s18 = scalar_lea.vmem %s38_s17, 256  ;;  %p73_p6 = scmp.lt.s32.totalorder %s38_s17, %s38_s17 }
  0x10   :  { %29 = vst [vmem:[#allocation7] sm:$0xff] %v27_v3  ;;  %30 = vst [vmem:[#allocation7 + $0x8] sm:$0xff] %v28_v4  ;;  %p69_p5 = scmp.ne.s32.totalorder %s38_s17, %s68_s18  ;;  %p74_p7 = scmp.lt.s32.totalorder %s68_s18, %s68_s18 }
  0x12   :  { %p75_p8 = por %p74_p7, %p73_p6 }
  0x14   :  { %p76_p9 = pnand %p75_p8, %p69_p5 }
  0x16   :  { %79 = shalt.err (!%p76_p9)
}
  0x17   :  { %40 = dma.vmem_to_hbm [thread:$0]  %s38_s17, 256, %s120_s2, [#allocation6]  }
  0x18   :  { %90 = dma.done.wait [#allocation6], 256  }
  0x19   :  { %91 = vsyncadd [#allocation6], 4294967040 }
  0x1a   :  { %44 = vsyncpa [#allocation5], 1 }
  0x1b   :  { %45 = vsyncpa [#allocation6], 1 }

</bundles_post_ra>
